<compile_context>
chip_gen: v7x
topology: tpu7x:2x2x1
jax: 0.10.0
libtpu: 0.0.40
codegen_flags: <defaults>
</compile_context>

<pallas_src>
import functools
import math

import jax
import jax.numpy as jnp
from jax.experimental import pallas as pl
from jax.experimental.pallas import tpu as pltpu


def _msa_kernel(x_ref, w_ref, b_ref, o_ref, *, batch, seq, n_groups, d_head):
    # x_ref: (B*T, d)   all batch rows, both streams / all heads along the feature dim
    # w_ref: (d, 3d)    [Wq | Wk | Wv], each block-diagonal per (stream, head), pre-transposed
    # b_ref: (1, 3d)    matching biases (Q part pre-scaled by 1/sqrt(d_head))
    d = n_groups * d_head
    x = x_ref[...]                                                           # (B*T, d)

    # One fused MXU matmul projects Q, K and V for every (stream, head) pair at once.
    qkv = jnp.dot(x, w_ref[...], preferred_element_type=jnp.float32) + b_ref[...]
    q = qkv[:, 0 * d:1 * d]
    k = qkv[:, 1 * d:2 * d]
    v = qkv[:, 2 * d:3 * d]

    rows = []
    for b in range(batch):                      # static unroll over the (tiny) batch
        rs = slice(b * seq, (b + 1) * seq)
        outs = []
        for g in range(n_groups):               # static unroll over (stream, head) pairs
            cs = slice(g * d_head, (g + 1) * d_head)
            qg, kg, vg = q[rs, cs], k[rs, cs], v[rs, cs]
            # scores = qg @ kg.T  (1/sqrt(d_head) already folded into Wq/bq on the host)
            s = jax.lax.dot_general(qg, kg, (((1,), (1,)), ((), ())),
                                    preferred_element_type=jnp.float32)      # (T, T)
            m = jnp.max(s, axis=-1, keepdims=True)
            e = jnp.exp(s - m)
            denom = jnp.sum(e, axis=-1, keepdims=True)
            r = pl.reciprocal(denom, approx=True)        # EUP slot (otherwise idle)
            r = r * (2.0 - denom * r)                    # one NR step -> ~f32 accuracy
            outs.append(jnp.dot(e * r, vg, preferred_element_type=jnp.float32))
        rows.append(jnp.concatenate(outs, axis=-1))      # (T, d) for this batch element

    # Single store of the full (B*T, d) output block.
    o_ref[...] = jnp.concatenate(rows, axis=0).astype(o_ref.dtype)


def my_msa_pallas(x, wq, wk, wv, bq, bk, bv):
    """x: (B, T, d) float32.  w*: (H, d_head, d_head) in PyTorch (out, in) layout.  b*: (H, d_head)."""
    B, T, d = x.shape
    dhalf = d // 2
    H = wq.shape[0]
    d_head = dhalf // H
    n_groups = 2 * H                      # (stream, head) pairs laid out along the feature dim
    scale = 1.0 / math.sqrt(float(d_head))

    # Host/trace-time weight prep (tiny, one-time): pre-transpose each head's weight so the
    # kernel computes x @ W directly, duplicate for the two streams, assemble a (d, d)
    # block-diagonal matrix per projection, then concatenate Q|K|V into one (d, 3d) matrix.
    def block_diag_both_streams(w):                    # w: (H, d_head, d_head)
        wt = jnp.swapaxes(w, 1, 2)                     # per-head W.T  (in, out)
        blocks = jnp.concatenate([wt, wt], axis=0)     # groups: img heads then mask heads
        eye = jnp.eye(n_groups, dtype=w.dtype)
        return jnp.einsum('gij,gh->gihj', blocks, eye).reshape(d, d)

    wq_bd = block_diag_both_streams(wq) * scale        # fold 1/sqrt(d_head) into Q path
    wk_bd = block_diag_both_streams(wk)
    wv_bd = block_diag_both_streams(wv)
    w_qkv = jnp.concatenate([wq_bd, wk_bd, wv_bd], axis=1)            # (d, 3d)
    b_qkv = jnp.concatenate([jnp.tile(bq.reshape(-1), 2) * scale,
                             jnp.tile(bk.reshape(-1), 2),
                             jnp.tile(bv.reshape(-1), 2)]).reshape(1, 3 * d)

    x2 = x.reshape(B * T, d)                           # contiguous (free) reshape

    kernel = functools.partial(_msa_kernel, batch=B, seq=T,
                               n_groups=n_groups, d_head=d_head)

    out2 = pl.pallas_call(
        kernel,
        out_shape=jax.ShapeDtypeStruct((B * T, d), x.dtype),
        grid_spec=pltpu.PrefetchScalarGridSpec(
            num_scalar_prefetch=0,
            grid=(1,),                                            # single step: whole problem
            in_specs=[
                pl.BlockSpec((B * T, d), lambda i: (0, 0)),       # x (all rows)
                pl.BlockSpec((d, 3 * d), lambda i: (0, 0)),       # fused W_qkv
                pl.BlockSpec((1, 3 * d), lambda i: (0, 0)),       # fused bias
            ],
            out_specs=pl.BlockSpec((B * T, d), lambda i: (0, 0)),
        ),
        compiler_params=pltpu.CompilerParams(
            dimension_semantics=("arbitrary",)),
    )(x2, w_qkv, b_qkv)

    return out2.reshape(B, T, d)


def my_msa_reference(x, wq, wk, wv, bq, bk, bv):
    """Pure-JAX reference mirroring the PyTorch loops, for verification."""
    B, T, d = x.shape
    dhalf = d // 2
    H = wq.shape[0]
    d_head = dhalf // H
    scale = 1.0 / math.sqrt(float(d_head))

    def stream(xs):  # xs: (B, T, dhalf)
        outs = []
        for b in range(B):
            heads = []
            for h in range(H):
                seq = xs[b, :, h * d_head:(h + 1) * d_head]
                q = seq @ wq[h].T + bq[h]
                k = seq @ wk[h].T + bk[h]
                v = seq @ wv[h].T + bv[h]
                a = jax.nn.softmax(q @ k.T * scale, axis=-1)
                heads.append(a @ v)
            outs.append(jnp.concatenate(heads, axis=-1))
        return jnp.stack(outs, axis=0)

    img_out = stream(x[..., :dhalf])
    mask_out = stream(x[..., dhalf:])
    return jnp.concatenate([img_out, mask_out], axis=-1)


if __name__ == "__main__":
    # Module config: d = 32 -> internal self.d = 16, n_heads = 2, d_head = 8.
    B, T, d = 2, 8, 32
    n_heads = 2
    d_head = (d // 2) // n_heads

    key = jax.random.PRNGKey(0)
    kx, kwq, kwk, kwv, kbq, kbk, kbv = jax.random.split(key, 7)

    x = jax.random.normal(kx, (B, T, d), dtype=jnp.float32)

    # Deterministic parameter init (shapes match nn.Linear(d_head, d_head) per head).
    bound = 1.0 / math.sqrt(d_head)
    wq = jax.random.uniform(kwq, (n_heads, d_head, d_head), jnp.float32, -bound, bound)
    wk = jax.random.uniform(kwk, (n_heads, d_head, d_head), jnp.float32, -bound, bound)
    wv = jax.random.uniform(kwv, (n_heads, d_head, d_head), jnp.float32, -bound, bound)
    bq = jax.random.uniform(kbq, (n_heads, d_head), jnp.float32, -bound, bound)
    bk = jax.random.uniform(kbk, (n_heads, d_head), jnp.float32, -bound, bound)
    bv = jax.random.uniform(kbv, (n_heads, d_head), jnp.float32, -bound, bound)

    out = jax.block_until_ready(my_msa_pallas(x, wq, wk, wv, bq, bk, bv))
    ref = jax.block_until_ready(my_msa_reference(x, wq, wk, wv, bq, bk, bv))

    assert out.shape == (B, T, d), out.shape
    assert jnp.allclose(out, ref, atol=1e-4, rtol=1e-4), float(jnp.max(jnp.abs(out - ref)))
    print("KERNEL_OK")
</pallas_src>

<mosaic_0001>
module attributes {stable_mosaic.version = 11 : i64} {
  func.func @_msa_kernel(%arg0: i32, %arg1: memref<16x32xf32, #tpu.memory_space<vmem>>, %arg2: memref<32x96xf32, #tpu.memory_space<vmem>>, %arg3: memref<1x96xf32, #tpu.memory_space<vmem>>, %arg4: memref<16x32xf32, #tpu.memory_space<vmem>>) attributes {dimension_semantics = [#tpu.dimension_semantics<arbitrary>], iteration_bounds = array<i64: 1>, scalar_prefetch = 0 : i64, scratch_operands = 0 : i64, tpu.core_type = #tpu.core_type<tc>, window_params = [{pipeline_mode = #tpu.pipeline_mode<synchronous>, transform_indices = @transform_0, window_bounds = array<i64: 16, 32>}, {pipeline_mode = #tpu.pipeline_mode<synchronous>, transform_indices = @transform_1, window_bounds = array<i64: 32, 96>}, {pipeline_mode = #tpu.pipeline_mode<synchronous>, transform_indices = @transform_2, window_bounds = array<i64: 1, 96>}, {pipeline_mode = #tpu.pipeline_mode<synchronous>, transform_indices = @transform_3, window_bounds = array<i64: 16, 32>}]} {
    %c0 = arith.constant 0 : index
    %c0_0 = arith.constant 0 : index
    %0 = vector.load %arg1[%c0, %c0_0] : memref<16x32xf32, #tpu.memory_space<vmem>>, vector<16x32xf32>
    %c0_1 = arith.constant 0 : index
    %c0_2 = arith.constant 0 : index
    %1 = vector.load %arg2[%c0_1, %c0_2] : memref<32x96xf32, #tpu.memory_space<vmem>>, vector<32x96xf32>
    %cst = arith.constant dense<0.000000e+00> : vector<16x96xf32>
    %2 = tpu.matmul %0, %1, %cst {dimension_numbers = #tpu.dot_dimension_numbers<[1], [0], [0], [1], [0, 0, 1, 1], [], []>} : vector<16x32xf32>, vector<32x96xf32>, vector<16x96xf32> -> vector<16x96xf32>
    %c0_3 = arith.constant 0 : index
    %c0_4 = arith.constant 0 : index
    %3 = vector.load %arg3[%c0_3, %c0_4] : memref<1x96xf32, #tpu.memory_space<vmem>>, vector<1x96xf32>
    %4 = vector.broadcast %3 : vector<1x96xf32> to vector<16x96xf32>
    %5 = arith.addf %2, %4 : vector<16x96xf32>
    %6 = vector.extract_strided_slice %5 {offsets = [0, 0], sizes = [16, 32], strides = [1, 1]} : vector<16x96xf32> to vector<16x32xf32>
    %7 = vector.extract_strided_slice %5 {offsets = [0, 32], sizes = [16, 32], strides = [1, 1]} : vector<16x96xf32> to vector<16x32xf32>
    %8 = vector.extract_strided_slice %5 {offsets = [0, 64], sizes = [16, 32], strides = [1, 1]} : vector<16x96xf32> to vector<16x32xf32>
    %9 = vector.extract_strided_slice %6 {offsets = [0, 0], sizes = [8, 8], strides = [1, 1]} : vector<16x32xf32> to vector<8x8xf32>
    %10 = vector.extract_strided_slice %7 {offsets = [0, 0], sizes = [8, 8], strides = [1, 1]} : vector<16x32xf32> to vector<8x8xf32>
    %11 = vector.extract_strided_slice %8 {offsets = [0, 0], sizes = [8, 8], strides = [1, 1]} : vector<16x32xf32> to vector<8x8xf32>
    %cst_5 = arith.constant dense<0.000000e+00> : vector<8x8xf32>
    %12 = tpu.matmul %9, %10, %cst_5 {dimension_numbers = #tpu.dot_dimension_numbers<[1], [1], [0], [0], [0, 0, 1, 0], [], []>} : vector<8x8xf32>, vector<8x8xf32>, vector<8x8xf32> -> vector<8x8xf32>
    %cst_6 = arith.constant dense<0xFF800000> : vector<8xf32>
    %13 = vector.multi_reduction <maximumf>, %12, %cst_6 [1] : vector<8x8xf32> to vector<8xf32>
    %14 = vector.shape_cast %13 : vector<8xf32> to vector<8x1xf32>
    %15 = vector.broadcast %14 : vector<8x1xf32> to vector<8x8xf32>
    %16 = arith.subf %12, %15 : vector<8x8xf32>
    %17 = math.exp %16 : vector<8x8xf32>
    %cst_7 = arith.constant dense<0.000000e+00> : vector<8xf32>
    %18 = vector.multi_reduction <add>, %17, %cst_7 [1] : vector<8x8xf32> to vector<8xf32>
    %19 = vector.shape_cast %18 : vector<8xf32> to vector<8x1xf32>
    %20 = tpu.reciprocal %19 {approx = true} : vector<8x1xf32> -> vector<8x1xf32>
    %21 = arith.mulf %19, %20 : vector<8x1xf32>
    %cst_8 = arith.constant 2.000000e+00 : f32
    %22 = vector.broadcast %cst_8 : f32 to vector<8x1xf32>
    %23 = arith.subf %22, %21 : vector<8x1xf32>
    %24 = arith.mulf %20, %23 : vector<8x1xf32>
    %25 = vector.broadcast %24 : vector<8x1xf32> to vector<8x8xf32>
    %26 = arith.mulf %17, %25 : vector<8x8xf32>
    %cst_9 = arith.constant dense<0.000000e+00> : vector<8x8xf32>
    %27 = tpu.matmul %26, %11, %cst_9 {dimension_numbers = #tpu.dot_dimension_numbers<[1], [0], [0], [1], [0, 0, 1, 1], [], []>} : vector<8x8xf32>, vector<8x8xf32>, vector<8x8xf32> -> vector<8x8xf32>
    %28 = vector.extract_strided_slice %6 {offsets = [0, 8], sizes = [8, 8], strides = [1, 1]} : vector<16x32xf32> to vector<8x8xf32>
    %29 = vector.extract_strided_slice %7 {offsets = [0, 8], sizes = [8, 8], strides = [1, 1]} : vector<16x32xf32> to vector<8x8xf32>
    %30 = vector.extract_strided_slice %8 {offsets = [0, 8], sizes = [8, 8], strides = [1, 1]} : vector<16x32xf32> to vector<8x8xf32>
    %cst_10 = arith.constant dense<0.000000e+00> : vector<8x8xf32>
    %31 = tpu.matmul %28, %29, %cst_10 {dimension_numbers = #tpu.dot_dimension_numbers<[1], [1], [0], [0], [0, 0, 1, 0], [], []>} : vector<8x8xf32>, vector<8x8xf32>, vector<8x8xf32> -> vector<8x8xf32>
    %cst_11 = arith.constant dense<0xFF800000> : vector<8xf32>
    %32 = vector.multi_reduction <maximumf>, %31, %cst_11 [1] : vector<8x8xf32> to vector<8xf32>
    %33 = vector.shape_cast %32 : vector<8xf32> to vector<8x1xf32>
    %34 = vector.broadcast %33 : vector<8x1xf32> to vector<8x8xf32>
    %35 = arith.subf %31, %34 : vector<8x8xf32>
    %36 = math.exp %35 : vector<8x8xf32>
    %cst_12 = arith.constant dense<0.000000e+00> : vector<8xf32>
    %37 = vector.multi_reduction <add>, %36, %cst_12 [1] : vector<8x8xf32> to vector<8xf32>
    %38 = vector.shape_cast %37 : vector<8xf32> to vector<8x1xf32>
    %39 = tpu.reciprocal %38 {approx = true} : vector<8x1xf32> -> vector<8x1xf32>
    %40 = arith.mulf %38, %39 : vector<8x1xf32>
    %cst_13 = arith.constant 2.000000e+00 : f32
    %41 = vector.broadcast %cst_13 : f32 to vector<8x1xf32>
    %42 = arith.subf %41, %40 : vector<8x1xf32>
    %43 = arith.mulf %39, %42 : vector<8x1xf32>
    %44 = vector.broadcast %43 : vector<8x1xf32> to vector<8x8xf32>
    %45 = arith.mulf %36, %44 : vector<8x8xf32>
    %cst_14 = arith.constant dense<0.000000e+00> : vector<8x8xf32>
    %46 = tpu.matmul %45, %30, %cst_14 {dimension_numbers = #tpu.dot_dimension_numbers<[1], [0], [0], [1], [0, 0, 1, 1], [], []>} : vector<8x8xf32>, vector<8x8xf32>, vector<8x8xf32> -> vector<8x8xf32>
    %47 = vector.extract_strided_slice %6 {offsets = [0, 16], sizes = [8, 8], strides = [1, 1]} : vector<16x32xf32> to vector<8x8xf32>
    %48 = vector.extract_strided_slice %7 {offsets = [0, 16], sizes = [8, 8], strides = [1, 1]} : vector<16x32xf32> to vector<8x8xf32>
    %49 = vector.extract_strided_slice %8 {offsets = [0, 16], sizes = [8, 8], strides = [1, 1]} : vector<16x32xf32> to vector<8x8xf32>
    %cst_15 = arith.constant dense<0.000000e+00> : vector<8x8xf32>
    %50 = tpu.matmul %47, %48, %cst_15 {dimension_numbers = #tpu.dot_dimension_numbers<[1], [1], [0], [0], [0, 0, 1, 0], [], []>} : vector<8x8xf32>, vector<8x8xf32>, vector<8x8xf32> -> vector<8x8xf32>
    %cst_16 = arith.constant dense<0xFF800000> : vector<8xf32>
    %51 = vector.multi_reduction <maximumf>, %50, %cst_16 [1] : vector<8x8xf32> to vector<8xf32>
    %52 = vector.shape_cast %51 : vector<8xf32> to vector<8x1xf32>
    %53 = vector.broadcast %52 : vector<8x1xf32> to vector<8x8xf32>
    %54 = arith.subf %50, %53 : vector<8x8xf32>
    %55 = math.exp %54 : vector<8x8xf32>
    %cst_17 = arith.constant dense<0.000000e+00> : vector<8xf32>
    %56 = vector.multi_reduction <add>, %55, %cst_17 [1] : vector<8x8xf32> to vector<8xf32>
    %57 = vector.shape_cast %56 : vector<8xf32> to vector<8x1xf32>
    %58 = tpu.reciprocal %57 {approx = true} : vector<8x1xf32> -> vector<8x1xf32>
    %59 = arith.mulf %57, %58 : vector<8x1xf32>
    %cst_18 = arith.constant 2.000000e+00 : f32
    %60 = vector.broadcast %cst_18 : f32 to vector<8x1xf32>
    %61 = arith.subf %60, %59 : vector<8x1xf32>
    %62 = arith.mulf %58, %61 : vector<8x1xf32>
    %63 = vector.broadcast %62 : vector<8x1xf32> to vector<8x8xf32>
    %64 = arith.mulf %55, %63 : vector<8x8xf32>
    %cst_19 = arith.constant dense<0.000000e+00> : vector<8x8xf32>
    %65 = tpu.matmul %64, %49, %cst_19 {dimension_numbers = #tpu.dot_dimension_numbers<[1], [0], [0], [1], [0, 0, 1, 1], [], []>} : vector<8x8xf32>, vector<8x8xf32>, vector<8x8xf32> -> vector<8x8xf32>
    %66 = vector.extract_strided_slice %6 {offsets = [0, 24], sizes = [8, 8], strides = [1, 1]} : vector<16x32xf32> to vector<8x8xf32>
    %67 = vector.extract_strided_slice %7 {offsets = [0, 24], sizes = [8, 8], strides = [1, 1]} : vector<16x32xf32> to vector<8x8xf32>
    %68 = vector.extract_strided_slice %8 {offsets = [0, 24], sizes = [8, 8], strides = [1, 1]} : vector<16x32xf32> to vector<8x8xf32>
    %cst_20 = arith.constant dense<0.000000e+00> : vector<8x8xf32>
    %69 = tpu.matmul %66, %67, %cst_20 {dimension_numbers = #tpu.dot_dimension_numbers<[1], [1], [0], [0], [0, 0, 1, 0], [], []>} : vector<8x8xf32>, vector<8x8xf32>, vector<8x8xf32> -> vector<8x8xf32>
    %cst_21 = arith.constant dense<0xFF800000> : vector<8xf32>
    %70 = vector.multi_reduction <maximumf>, %69, %cst_21 [1] : vector<8x8xf32> to vector<8xf32>
    %71 = vector.shape_cast %70 : vector<8xf32> to vector<8x1xf32>
    %72 = vector.broadcast %71 : vector<8x1xf32> to vector<8x8xf32>
    %73 = arith.subf %69, %72 : vector<8x8xf32>
    %74 = math.exp %73 : vector<8x8xf32>
    %cst_22 = arith.constant dense<0.000000e+00> : vector<8xf32>
    %75 = vector.multi_reduction <add>, %74, %cst_22 [1] : vector<8x8xf32> to vector<8xf32>
    %76 = vector.shape_cast %75 : vector<8xf32> to vector<8x1xf32>
    %77 = tpu.reciprocal %76 {approx = true} : vector<8x1xf32> -> vector<8x1xf32>
    %78 = arith.mulf %76, %77 : vector<8x1xf32>
    %cst_23 = arith.constant 2.000000e+00 : f32
    %79 = vector.broadcast %cst_23 : f32 to vector<8x1xf32>
    %80 = arith.subf %79, %78 : vector<8x1xf32>
    %81 = arith.mulf %77, %80 : vector<8x1xf32>
    %82 = vector.broadcast %81 : vector<8x1xf32> to vector<8x8xf32>
    %83 = arith.mulf %74, %82 : vector<8x8xf32>
    %cst_24 = arith.constant dense<0.000000e+00> : vector<8x8xf32>
    %84 = tpu.matmul %83, %68, %cst_24 {dimension_numbers = #tpu.dot_dimension_numbers<[1], [0], [0], [1], [0, 0, 1, 1], [], []>} : vector<8x8xf32>, vector<8x8xf32>, vector<8x8xf32> -> vector<8x8xf32>
    %85 = tpu.concatenate %27, %46, %65, %84 in 1 : vector<8x8xf32>, vector<8x8xf32>, vector<8x8xf32>, vector<8x8xf32> -> vector<8x32xf32>
    %86 = vector.extract_strided_slice %6 {offsets = [8, 0], sizes = [8, 8], strides = [1, 1]} : vector<16x32xf32> to vector<8x8xf32>
    %87 = vector.extract_strided_slice %7 {offsets = [8, 0], sizes = [8, 8], strides = [1, 1]} : vector<16x32xf32> to vector<8x8xf32>
    %88 = vector.extract_strided_slice %8 {offsets = [8, 0], sizes = [8, 8], strides = [1, 1]} : vector<16x32xf32> to vector<8x8xf32>
    %cst_25 = arith.constant dense<0.000000e+00> : vector<8x8xf32>
    %89 = tpu.matmul %86, %87, %cst_25 {dimension_numbers = #tpu.dot_dimension_numbers<[1], [1], [0], [0], [0, 0, 1, 0], [], []>} : vector<8x8xf32>, vector<8x8xf32>, vector<8x8xf32> -> vector<8x8xf32>
    %cst_26 = arith.constant dense<0xFF800000> : vector<8xf32>
    %90 = vector.multi_reduction <maximumf>, %89, %cst_26 [1] : vector<8x8xf32> to vector<8xf32>
    %91 = vector.shape_cast %90 : vector<8xf32> to vector<8x1xf32>
    %92 = vector.broadcast %91 : vector<8x1xf32> to vector<8x8xf32>
    %93 = arith.subf %89, %92 : vector<8x8xf32>
    %94 = math.exp %93 : vector<8x8xf32>
    %cst_27 = arith.constant dense<0.000000e+00> : vector<8xf32>
    %95 = vector.multi_reduction <add>, %94, %cst_27 [1] : vector<8x8xf32> to vector<8xf32>
    %96 = vector.shape_cast %95 : vector<8xf32> to vector<8x1xf32>
    %97 = tpu.reciprocal %96 {approx = true} : vector<8x1xf32> -> vector<8x1xf32>
    %98 = arith.mulf %96, %97 : vector<8x1xf32>
    %cst_28 = arith.constant 2.000000e+00 : f32
    %99 = vector.broadcast %cst_28 : f32 to vector<8x1xf32>
    %100 = arith.subf %99, %98 : vector<8x1xf32>
    %101 = arith.mulf %97, %100 : vector<8x1xf32>
    %102 = vector.broadcast %101 : vector<8x1xf32> to vector<8x8xf32>
    %103 = arith.mulf %94, %102 : vector<8x8xf32>
    %cst_29 = arith.constant dense<0.000000e+00> : vector<8x8xf32>
    %104 = tpu.matmul %103, %88, %cst_29 {dimension_numbers = #tpu.dot_dimension_numbers<[1], [0], [0], [1], [0, 0, 1, 1], [], []>} : vector<8x8xf32>, vector<8x8xf32>, vector<8x8xf32> -> vector<8x8xf32>
    %105 = vector.extract_strided_slice %6 {offsets = [8, 8], sizes = [8, 8], strides = [1, 1]} : vector<16x32xf32> to vector<8x8xf32>
    %106 = vector.extract_strided_slice %7 {offsets = [8, 8], sizes = [8, 8], strides = [1, 1]} : vector<16x32xf32> to vector<8x8xf32>
    %107 = vector.extract_strided_slice %8 {offsets = [8, 8], sizes = [8, 8], strides = [1, 1]} : vector<16x32xf32> to vector<8x8xf32>
    %cst_30 = arith.constant dense<0.000000e+00> : vector<8x8xf32>
    %108 = tpu.matmul %105, %106, %cst_30 {dimension_numbers = #tpu.dot_dimension_numbers<[1], [1], [0], [0], [0, 0, 1, 0], [], []>} : vector<8x8xf32>, vector<8x8xf32>, vector<8x8xf32> -> vector<8x8xf32>
    %cst_31 = arith.constant dense<0xFF800000> : vector<8xf32>
    %109 = vector.multi_reduction <maximumf>, %108, %cst_31 [1] : vector<8x8xf32> to vector<8xf32>
    %110 = vector.shape_cast %109 : vector<8xf32> to vector<8x1xf32>
    %111 = vector.broadcast %110 : vector<8x1xf32> to vector<8x8xf32>
    %112 = arith.subf %108, %111 : vector<8x8xf32>
    %113 = math.exp %112 : vector<8x8xf32>
    %cst_32 = arith.constant dense<0.000000e+00> : vector<8xf32>
    %114 = vector.multi_reduction <add>, %113, %cst_32 [1] : vector<8x8xf32> to vector<8xf32>
    %115 = vector.shape_cast %114 : vector<8xf32> to vector<8x1xf32>
    %116 = tpu.reciprocal %115 {approx = true} : vector<8x1xf32> -> vector<8x1xf32>
    %117 = arith.mulf %115, %116 : vector<8x1xf32>
    %cst_33 = arith.constant 2.000000e+00 : f32
    %118 = vector.broadcast %cst_33 : f32 to vector<8x1xf32>
    %119 = arith.subf %118, %117 : vector<8x1xf32>
    %120 = arith.mulf %116, %119 : vector<8x1xf32>
    %121 = vector.broadcast %120 : vector<8x1xf32> to vector<8x8xf32>
    %122 = arith.mulf %113, %121 : vector<8x8xf32>
    %cst_34 = arith.constant dense<0.000000e+00> : vector<8x8xf32>
    %123 = tpu.matmul %122, %107, %cst_34 {dimension_numbers = #tpu.dot_dimension_numbers<[1], [0], [0], [1], [0, 0, 1, 1], [], []>} : vector<8x8xf32>, vector<8x8xf32>, vector<8x8xf32> -> vector<8x8xf32>
    %124 = vector.extract_strided_slice %6 {offsets = [8, 16], sizes = [8, 8], strides = [1, 1]} : vector<16x32xf32> to vector<8x8xf32>
    %125 = vector.extract_strided_slice %7 {offsets = [8, 16], sizes = [8, 8], strides = [1, 1]} : vector<16x32xf32> to vector<8x8xf32>
    %126 = vector.extract_strided_slice %8 {offsets = [8, 16], sizes = [8, 8], strides = [1, 1]} : vector<16x32xf32> to vector<8x8xf32>
    %cst_35 = arith.constant dense<0.000000e+00> : vector<8x8xf32>
    %127 = tpu.matmul %124, %125, %cst_35 {dimension_numbers = #tpu.dot_dimension_numbers<[1], [1], [0], [0], [0, 0, 1, 0], [], []>} : vector<8x8xf32>, vector<8x8xf32>, vector<8x8xf32> -> vector<8x8xf32>
    %cst_36 = arith.constant dense<0xFF800000> : vector<8xf32>
    %128 = vector.multi_reduction <maximumf>, %127, %cst_36 [1] : vector<8x8xf32> to vector<8xf32>
    %129 = vector.shape_cast %128 : vector<8xf32> to vector<8x1xf32>
    %130 = vector.broadcast %129 : vector<8x1xf32> to vector<8x8xf32>
    %131 = arith.subf %127, %130 : vector<8x8xf32>
    %132 = math.exp %131 : vector<8x8xf32>
    %cst_37 = arith.constant dense<0.000000e+00> : vector<8xf32>
    %133 = vector.multi_reduction <add>, %132, %cst_37 [1] : vector<8x8xf32> to vector<8xf32>
    %134 = vector.shape_cast %133 : vector<8xf32> to vector<8x1xf32>
    %135 = tpu.reciprocal %134 {approx = true} : vector<8x1xf32> -> vector<8x1xf32>
    %136 = arith.mulf %134, %135 : vector<8x1xf32>
    %cst_38 = arith.constant 2.000000e+00 : f32
    %137 = vector.broadcast %cst_38 : f32 to vector<8x1xf32>
    %138 = arith.subf %137, %136 : vector<8x1xf32>
    %139 = arith.mulf %135, %138 : vector<8x1xf32>
    %140 = vector.broadcast %139 : vector<8x1xf32> to vector<8x8xf32>
    %141 = arith.mulf %132, %140 : vector<8x8xf32>
    %cst_39 = arith.constant dense<0.000000e+00> : vector<8x8xf32>
    %142 = tpu.matmul %141, %126, %cst_39 {dimension_numbers = #tpu.dot_dimension_numbers<[1], [0], [0], [1], [0, 0, 1, 1], [], []>} : vector<8x8xf32>, vector<8x8xf32>, vector<8x8xf32> -> vector<8x8xf32>
    %143 = vector.extract_strided_slice %6 {offsets = [8, 24], sizes = [8, 8], strides = [1, 1]} : vector<16x32xf32> to vector<8x8xf32>
    %144 = vector.extract_strided_slice %7 {offsets = [8, 24], sizes = [8, 8], strides = [1, 1]} : vector<16x32xf32> to vector<8x8xf32>
    %145 = vector.extract_strided_slice %8 {offsets = [8, 24], sizes = [8, 8], strides = [1, 1]} : vector<16x32xf32> to vector<8x8xf32>
    %cst_40 = arith.constant dense<0.000000e+00> : vector<8x8xf32>
    %146 = tpu.matmul %143, %144, %cst_40 {dimension_numbers = #tpu.dot_dimension_numbers<[1], [1], [0], [0], [0, 0, 1, 0], [], []>} : vector<8x8xf32>, vector<8x8xf32>, vector<8x8xf32> -> vector<8x8xf32>
    %cst_41 = arith.constant dense<0xFF800000> : vector<8xf32>
    %147 = vector.multi_reduction <maximumf>, %146, %cst_41 [1] : vector<8x8xf32> to vector<8xf32>
    %148 = vector.shape_cast %147 : vector<8xf32> to vector<8x1xf32>
    %149 = vector.broadcast %148 : vector<8x1xf32> to vector<8x8xf32>
    %150 = arith.subf %146, %149 : vector<8x8xf32>
    %151 = math.exp %150 : vector<8x8xf32>
    %cst_42 = arith.constant dense<0.000000e+00> : vector<8xf32>
    %152 = vector.multi_reduction <add>, %151, %cst_42 [1] : vector<8x8xf32> to vector<8xf32>
    %153 = vector.shape_cast %152 : vector<8xf32> to vector<8x1xf32>
    %154 = tpu.reciprocal %153 {approx = true} : vector<8x1xf32> -> vector<8x1xf32>
    %155 = arith.mulf %153, %154 : vector<8x1xf32>
    %cst_43 = arith.constant 2.000000e+00 : f32
    %156 = vector.broadcast %cst_43 : f32 to vector<8x1xf32>
    %157 = arith.subf %156, %155 : vector<8x1xf32>
    %158 = arith.mulf %154, %157 : vector<8x1xf32>
    %159 = vector.broadcast %158 : vector<8x1xf32> to vector<8x8xf32>
    %160 = arith.mulf %151, %159 : vector<8x8xf32>
    %cst_44 = arith.constant dense<0.000000e+00> : vector<8x8xf32>
    %161 = tpu.matmul %160, %145, %cst_44 {dimension_numbers = #tpu.dot_dimension_numbers<[1], [0], [0], [1], [0, 0, 1, 1], [], []>} : vector<8x8xf32>, vector<8x8xf32>, vector<8x8xf32> -> vector<8x8xf32>
    %162 = tpu.concatenate %104, %123, %142, %161 in 1 : vector<8x8xf32>, vector<8x8xf32>, vector<8x8xf32>, vector<8x8xf32> -> vector<8x32xf32>
    %163 = tpu.concatenate %85, %162 in 0 : vector<8x32xf32>, vector<8x32xf32> -> vector<16x32xf32>
    %c0_45 = arith.constant 0 : index
    %c0_46 = arith.constant 0 : index
    %164 = vector.load %arg4[%c0_45, %c0_46] : memref<16x32xf32, #tpu.memory_space<vmem>>, vector<16x32xf32>
    tpu.vector_store %arg4[%c0_45, %c0_46], %163 {strides = array<i32>} : memref<16x32xf32, #tpu.memory_space<vmem>>, vector<16x32xf32>,
    return
  }
  func.func @transform_0(%arg0: i32) -> (i32, i32) {
    %c0_i32 = arith.constant 0 : i32
    %c0_i32_0 = arith.constant 0 : i32
    %c0_i32_1 = arith.constant 0 : i32
    return %c0_i32, %c0_i32_0 : i32, i32
  }
  func.func @transform_1(%arg0: i32) -> (i32, i32) {
    %c0_i32 = arith.constant 0 : i32
    %c0_i32_0 = arith.constant 0 : i32
    %c0_i32_1 = arith.constant 0 : i32
    return %c0_i32, %c0_i32_0 : i32, i32
  }
  func.func @transform_2(%arg0: i32) -> (i32, i32) {
    %c0_i32 = arith.constant 0 : i32
    %c0_i32_0 = arith.constant 0 : i32
    %c0_i32_1 = arith.constant 0 : i32
    return %c0_i32, %c0_i32_0 : i32, i32
  }
  func.func @transform_3(%arg0: i32) -> (i32, i32) {
    %c0_i32 = arith.constant 0 : i32
    %c0_i32_0 = arith.constant 0 : i32
    %c0_i32_1 = arith.constant 0 : i32
    return %c0_i32, %c0_i32_0 : i32, i32
  }
}

</mosaic_0001>

<bundles_post_ra>
// kernel: tpu_custom_call.1
= control target key start
LH: loop header
LB: loop body
LE: loop exit
PB: predicated region body
PF: predicated region fallthrough
CT: control target
= control target key end

     0   :  { %8 = vsyncpa [#allocation3], 0  ;;  %s2073_s0 = inlined_call_operand.hbm [shape: f32[16,32], index: 0, kind: input, shape index: {}]   ;;  %s2074_s1 = inlined_call_operand.hbm [shape: f32[32,96], index: 1, kind: input, shape index: {}]   ;;  %s2075_s2 = inlined_call_operand.vmem [shape: f32[1,96], index: 2, kind: input, shape index: {}]   ;;  %s2076_s3 = inlined_call_operand.hbm [shape: f32[16,32], index: 3, kind: output, shape index: {}]  }
   0x1   :  { %9 = vsyncpa [#allocation6], 0 }
   0x2   :  { %10 = vsyncpa [#allocation4], 0  ;;  %s1821_s12 = smov [#allocation2]   ;;  %s1749_s16 = scalar_lea.hbm %s2073_s0, 256 }
   0x3   :  { %s16_s13 = sshll.u32 %s1821_s12, 4  ;;  %p1750_p0 = scmp.ne.s32.totalorder %s2073_s0, %s1749_s16  ;;  %s17_s13 = int_to_ptr.vmem [resolvable:$true] %s16_s13 }
   0x4   :  { %p1753_p1 = scmp.lt.u32.totalorder %s1749_s16, %s2073_s0 }
   0x6   :  { %p1755_p2 = pnand %p1753_p1, %p1750_p0 }
   0x8   :  { %1758 = shalt.err (!%p1755_p2)
}
   0x9   :  { %s1759_s21 = scalar_lea.vmem %s17_s13, 256  ;;  %p1764_p4 = scmp.lt.s32.totalorder %s17_s13, %s17_s13 }
   0xa   :  { %p1760_p3 = scmp.ne.s32.totalorder %s17_s13, %s1759_s21  ;;  %p1765_p5 = scmp.lt.s32.totalorder %s1759_s21, %s1759_s21 }
   0xc   :  { %p1766_p6 = por %p1765_p5, %p1764_p4 }
   0xe   :  { %p1767_p7 = pnand %p1766_p6, %p1760_p3 }
  0x10   :  { %1770 = shalt.err (!%p1767_p7)
}
  0x11   :  { %s1822_s22 = smov 128   ;;  %s1823_s23 = smov 8  }
  0x12   :  { %22 = dma.hbm_to_vmem [thread:$0]  %s2073_s0, 256, %s17_s13, [#allocation3], %s1822_s22, %s1822_s22, %s1823_s23  }
  0x13   :  { %s1824_s26 = smov [#allocation5]   ;;  %s1771_s30 = scalar_lea.hbm %s2074_s1, 512 }
  0x14   :  { %s28_s27 = sshll.u32 %s1824_s26, 4  ;;  %p1772_p8 = scmp.ne.s32.totalorder %s2074_s1, %s1771_s30  ;;  %s29_s27 = int_to_ptr.vmem [resolvable:$true] %s28_s27 }
  0x15   :  { %p1775_p9 = scmp.lt.u32.totalorder %s1771_s30, %s2074_s1 }
  0x17   :  { %p1777_p10 = pnand %p1775_p9, %p1772_p8 }
  0x19   :  { %1780 = shalt.err (!%p1777_p10)
}
  0x1a   :  { %s1781_s8 = scalar_lea.vmem %s29_s27, 512  ;;  %p1786_p12 = scmp.lt.s32.totalorder %s29_s27, %s29_s27 }
  0x1b   :  { %p1782_p11 = scmp.ne.s32.totalorder %s29_s27, %s1781_s8  ;;  %p1787_p13 = scmp.lt.s32.totalorder %s1781_s8, %s1781_s8 }
  0x1d   :  { %p1788_p0 = por %p1787_p13, %p1786_p12 }
  0x1f   :  { %p1789_p1 = pnand %p1788_p0, %p1782_p11 }
  0x21   :  { %1792 = shalt.err (!%p1789_p1)
}
  0x22   :  { %34 = dma.hbm_to_vmem [thread:$0]  %s2074_s1, 512, %s29_s27, [#allocation6], %s1822_s22, %s1822_s22, %s1823_s23  }
  0x23   :  { %1815 = dma.done.wait [#allocation3], 256  }
  0x24   :  { %1816 = vsyncadd [#allocation3], 4294967040 }
  0x25   :  { %1817 = dma.done.wait [#allocation6], 512  }
  0x26   :  { %1818 = vsyncadd [#allocation6], 4294966784  ;;  %vm56_vm0 = vcmask 261120   ;;  %v45_v0 = vld [vmem:[#allocation5] sm:$0xff]  ;;  %v46_v1 = vld [vmem:[#allocation5 + $0x8] sm:$0xff]  ;;  %v1825_v8 = vmov 0.0  }
  0x27   :  { %v47_v2 = vld [vmem:[#allocation5 + $0x10] sm:$0xff]  ;;  %v1689_v3 = vpack.c.bf16 %v46_v1, %v45_v0  ;;  %v48_v4 = vld [vmem:[#allocation5 + $0x18] sm:$0xff]  ;;  %1609 = vmatprep.subr.mxu1 %v1825_v8  ;;  %vm1826_vm1 = vmmov 0   ;;  %s1827_s11 = smov 120   ;;  %s1828_s12 = smov 96   ;;  %vm141_vm2 = vcmask 64512  }
  0x28   :  { %v43_v5 = vld [vmem:[#allocation2] sm:$0xff]  ;;  %v1693_v6 = vpack.c.bf16 %v48_v4, %v47_v2  ;;  %v44_v7 = vld [vmem:[#allocation2 + $0x8] sm:$0xff]  ;;  %1611 = vmatprep.mubr.msk.f32.mxu1 %vm1826_vm1, %v1825_v8  ;;  %s1829_s13 = smov 80   ;;  %s1830_s14 = smov 88   ;;  %vm823_vm3 = vcmask 130048   ;;  %vm825_vm4 = vcmask 195584  }
  0x29   :  { %1606 = vmatprep.mubr.msk.f32.mxu0 %vm56_vm0, %v43_v5  ;;  %1690 = vmatprep.subr.bf16.mxu0 %v1689_v3  ;;  %v1533_v9 = vld [vmem:[%s2075_s2] ss:$0 sm:$0xff]  ;;  %s1831_s15 = smov 72   ;;  %s1832_s2 = smov 112  }
  0x2a   :  { %1692 = vmatpush3.bf16.msra.mxu0 %v1689_v3  ;;  %s1833_s16 = smov 104   ;;  %s1834_s17 = smov 64  }
  0x2b   :  { %1694 = vmatprep.subr.bf16.mxu0 %v1693_v6  ;;  %s1835_s18 = smov 48   ;;  %s1836_s19 = smov 40  }
  0x2c   :  { %s1837_s20 = smov 56   ;;  %s1838_s21 = smov 16  }
  0x2d   :  { %s1839_s24 = smov 24   ;;  %s1840_s25 = smov [#allocation7]  }
  0x2e   :  { %1696 = vmatpush3.bf16.msra.mxu0 %v1693_v6  ;;  %s1520_s26 = sshll.u32 %s1840_s25, 4  ;;  %s1521_s26 = int_to_ptr.vmem [resolvable:$true] %s1520_s26 }
  0x2f   :  { %1619 = vmatprep.subr.mxu0 %v1825_v8  ;;  %s1793_s27 = scalar_lea.vmem %s1521_s26, 256  ;;  %p1798_p3 = scmp.lt.s32.totalorder %s1521_s26, %s1521_s26 }
  0x30   :  { %p1794_p2 = scmp.ne.s32.totalorder %s1521_s26, %s1793_s27  ;;  %p1799_p4 = scmp.lt.s32.totalorder %s1793_s27, %s1793_s27 }
  0x31   :  { %1607 = vmatmul.mubr.msk.f32.vlgmr.msra.gmra.mrb[0].mxu0 %vm56_vm0, %v44_v7 }
  0x32   :  { %1621 = vmatprep.mubr.msk.f32.mxu0 %vm1826_vm1, %v1825_v8  ;;  %p1800_p5 = por %p1799_p4, %p1798_p3 }
  0x34   :  { %p1801_p6 = pnand %p1800_p5, %p1794_p2 }
 0x104   :  { %v1608_v10 = vpop.f32.mrb[0].mxu0 }
 0x105   :  { %v129_v11 = vpop.f32.mrb[1].mxu0  ;;  %v1910_v13 = vadd.f32 %v1608_v10, %v1533_v9 }
 0x106   :  { %v1902_v12 = vadd.f32 %v1533_v9, %v129_v11 }
 0x108   :  { %306 = vrot.lane.b32.xlu1 %v1902_v12, %s1827_s11  ;;  %139 = vrot.lane.b32.xlu0 %v1902_v12, %s1828_s12 }
 0x10c   :  { %476 = vrot.lane.b32.xlu1 %v1902_v12, %s1829_s13  ;;  %308 = vrot.lane.b32.xlu0 %v1902_v12, %s1830_s14 }
 0x110   :  { %644 = vrot.lane.b32.xlu1 %v1902_v12, %s1831_s15  ;;  %474 = vrot.lane.b32.xlu0 %v1902_v12, %s1832_s2 }
 0x114   :  { %828 = vrot.lane.b32.xlu1 %v1910_v13, %s1828_s12  ;;  %642 = vrot.lane.b32.xlu0 %v1902_v12, %s1833_s16 }
 0x118   :  { %994 = vrot.lane.b32.xlu1 %v1910_v13, %s1827_s11  ;;  %996 = vrot.lane.b32.xlu0 %v1910_v13, %s1830_s14 }
 0x11c   :  { %1162 = vrot.lane.b32.xlu1 %v1910_v13, %s1832_s2  ;;  %1164 = vrot.lane.b32.xlu0 %v1910_v13, %s1829_s13 }
 0x120   :  { %1330 = vrot.lane.b32.xlu1 %v1910_v13, %s1833_s16  ;;  %1332 = vrot.lane.b32.xlu0 %v1910_v13, %s1831_s15 }
 0x124   :  { %230 = vrot.lane.b32.xlu1 %v1902_v12, %s1834_s17 }
 0x17a   :  { %v307_v14 = vpop.permute.xlu1 %306  ;;  %v140_v15 = vpop.permute.xlu0 %139 }
 0x17b   :  { %1610 = vmatpush3.xpose.msk.msra.mxu1 %vm141_vm2, %v140_v15 }
 0x17c   :  { %1614 = vmatprep.subr.mxu1 %v1825_v8 }
 0x17e   :  { %v477_v16 = vpop.permute.xlu1 %476  ;;  %1612 = vmatmul.mubr.msk.f32.vlgmr.msra.gmra.mrb[0].mxu1 %vm141_vm2, %v1902_v12  ;;  %v309_v17 = vpop.permute.xlu0 %308 }
 0x17f   :  { %1620 = vmatpush3.xpose.msk.msra.mxu0 %vm141_vm2, %v309_v17  ;;  %1616 = vmatprep.mubr.msk.f32.mxu1 %vm1826_vm1, %v1825_v8 }
 0x180   :  { %1629 = vmatprep.subr.mxu0 %v1825_v8 }
 0x182   :  { %v645_v18 = vpop.permute.xlu1 %644  ;;  %1622 = vmatmul.mubr.msk.f32.vlgmr.msra.gmra.mrb[2].mxu0 %vm141_vm2, %v307_v14  ;;  %v475_v19 = vpop.permute.xlu0 %474 }
 0x183   :  { %1630 = vmatpush3.xpose.msk.msra.mxu0 %vm141_vm2, %v477_v16  ;;  %1631 = vmatprep.mubr.msk.f32.mxu0 %vm1826_vm1, %v1825_v8 }
 0x184   :  { %1639 = vmatprep.subr.mxu0 %v1825_v8 }
 0x186   :  { %v829_v20 = vpop.permute.xlu1 %828  ;;  %1632 = vmatmul.mubr.msk.f32.vlgmr.msra.gmra.mrb[4].mxu0 %vm141_vm2, %v475_v19  ;;  %v643_v21 = vpop.permute.xlu0 %642 }
 0x187   :  { %1640 = vmatpush3.xpose.msk.msra.mxu0 %vm141_vm2, %v645_v18  ;;  %1641 = vmatprep.mubr.msk.f32.mxu0 %vm1826_vm1, %v1825_v8 }
 0x188   :  { %1649 = vmatprep.subr.mxu0 %v1825_v8 }
 0x18a   :  { %v995_v22 = vpop.permute.xlu1 %994  ;;  %1642 = vmatmul.mubr.msk.f32.vlgmr.msra.gmra.mrb[6].mxu0 %vm141_vm2, %v643_v21  ;;  %v997_v23 = vpop.permute.xlu0 %996 }
 0x18b   :  { %1650 = vmatpush3.xpose.msk.msra.mxu0 %vm141_vm2, %v829_v20  ;;  %1651 = vmatprep.mubr.msk.f32.mxu0 %vm1826_vm1, %v1825_v8 }
 0x18c   :  { %1659 = vmatprep.subr.mxu0 %v1825_v8 }
 0x18e   :  { %v1163_v24 = vpop.permute.xlu1 %1162  ;;  %1652 = vmatmul.mubr.msk.f32.vlgmr.msra.gmra.mrb[8].mxu0 %vm141_vm2, %v1910_v13  ;;  %v1165_v25 = vpop.permute.xlu0 %1164 }
 0x18f   :  { %1660 = vmatpush3.xpose.msk.msra.mxu0 %vm141_vm2, %v997_v23  ;;  %1661 = vmatprep.mubr.msk.f32.mxu0 %vm1826_vm1, %v1825_v8 }
 0x190   :  { %1669 = vmatprep.subr.mxu0 %v1825_v8 }
 0x192   :  { %v1331_v26 = vpop.permute.xlu1 %1330  ;;  %1662 = vmatmul.mubr.msk.f32.vlgmr.msra.gmra.mrb[10].mxu0 %vm141_vm2, %v995_v22  ;;  %v1333_v27 = vpop.permute.xlu0 %1332 }
 0x193   :  { %1670 = vmatpush3.xpose.msk.msra.mxu0 %vm141_vm2, %v1165_v25  ;;  %1671 = vmatprep.mubr.msk.f32.mxu0 %vm1826_vm1, %v1825_v8 }
 0x194   :  { %1679 = vmatprep.subr.mxu0 %v1825_v8 }
 0x196   :  { %v231_v28 = vpop.permute.xlu1 %230  ;;  %1672 = vmatmul.mubr.msk.f32.vlgmr.msra.gmra.mrb[12].mxu0 %vm141_vm2, %v1163_v24 }
 0x197   :  { %1615 = vmatpush3.msra.mxu1 %v231_v28  ;;  %1680 = vmatpush3.xpose.msk.msra.mxu0 %vm141_vm2, %v1333_v27 }
 0x198   :  { %1681 = vmatprep.mubr.msk.f32.mxu0 %vm1826_vm1, %v1825_v8  ;;  %1624 = vmatprep.subr.mxu1 %v1825_v8 }
 0x19a   :  { %1682 = vmatmul.mubr.msk.f32.vlgmr.msra.gmra.mrb[14].mxu0 %vm141_vm2, %v1331_v26 }
 0x251   :  { %v212_v29 = vpop.f32.mrb[0].mxu1 }
 0x252   :  { %v1613_v30 = vpop.f32.mrb[1].mxu1  ;;  %v216_v31 = vsel %vm141_vm2, %v212_v29, -inf }
 0x253   :  { %217 = vmax.xlane.f32.xlu0 %v216_v31 }
 0x255   :  { %v380_v32 = vpop.f32.mrb[2].mxu0 }
 0x256   :  { %v1623_v33 = vpop.f32.mrb[3].mxu0  ;;  %v384_v34 = vsel %vm141_vm2, %v380_v32, -inf }
 0x257   :  { %385 = vmax.xlane.f32.xlu1 %v384_v34 }
 0x259   :  { %v548_v35 = vpop.f32.mrb[4].mxu0 }
 0x25a   :  { %v1633_v36 = vpop.f32.mrb[5].mxu0  ;;  %v552_v37 = vsel %vm141_vm2, %v548_v35, -inf }
 0x25b   :  { %553 = vmax.xlane.f32.xlu0 %v552_v37 }
 0x25d   :  { %v716_v38 = vpop.f32.mrb[6].mxu0 }
 0x25e   :  { %v1643_v39 = vpop.f32.mrb[7].mxu0  ;;  %v720_v40 = vsel %vm141_vm2, %v716_v38, -inf }
 0x25f   :  { %721 = vmax.xlane.f32.xlu0 %v720_v40 }
 0x261   :  { %v900_v41 = vpop.f32.mrb[8].mxu0 }
 0x262   :  { %v1653_v42 = vpop.f32.mrb[9].mxu0  ;;  %v904_v43 = vsel %vm141_vm2, %v900_v41, -inf }
 0x263   :  { %905 = vmax.xlane.f32.xlu1 %v904_v43 }
 0x265   :  { %v1068_v44 = vpop.f32.mrb[10].mxu0 }
 0x266   :  { %v1663_v45 = vpop.f32.mrb[11].mxu0  ;;  %v1072_v46 = vsel %vm141_vm2, %v1068_v44, -inf }
 0x267   :  { %1073 = vmax.xlane.f32.xlu0 %v1072_v46 }
 0x269   :  { %v1236_v47 = vpop.f32.mrb[12].mxu0 }
 0x26a   :  { %v1673_v48 = vpop.f32.mrb[13].mxu0  ;;  %v1240_v49 = vsel %vm141_vm2, %v1236_v47, -inf }
 0x26b   :  { %1241 = vmax.xlane.f32.xlu1 %v1240_v49 }
 0x26d   :  { %v1404_v50 = vpop.f32.mrb[14].mxu0 }
 0x26e   :  { %v1683_v51 = vpop.f32.mrb[15].mxu0  ;;  %v1408_v52 = vsel %vm141_vm2, %v1404_v50, -inf }
 0x26f   :  { %1409 = vmax.xlane.f32.xlu0 %v1408_v52 }
 0x27c   :  { %566 = vrot.lane.b32.xlu1 %v1902_v12, %s1835_s18 }
 0x280   :  { %734 = vrot.lane.b32.xlu1 %v1902_v12, %s1836_s19 }
 0x285   :  { %398 = vrot.lane.b32.xlu0 %v1902_v12, %s1837_s20 }
 0x2e0   :  { %v218_v53 = vpop.xlane.xlu0 %217 }
 0x2e1   :  { %v219_v54 = vsub.f32 %v212_v29, %v218_v53 }
 0x2e3   :  { %v220_v55 = vmul.f32 1.442695, %v219_v54 }
 0x2e4   :  { %v386_v56 = vpop.xlane.xlu1 %385 }
 0x2e5   :  { %1717 = vpow2.f32 %v220_v55  ;;  %v387_v57 = vsub.f32 %v380_v32, %v386_v56 }
 0x2e7   :  { %v388_v58 = vmul.f32 1.442695, %v387_v57 }
 0x2e8   :  { %v554_v59 = vpop.xlane.xlu0 %553 }
 0x2e9   :  { %1719 = vpow2.f32 %v388_v58  ;;  %v555_v60 = vsub.f32 %v548_v35, %v554_v59 }
 0x2eb   :  { %v556_v61 = vmul.f32 1.442695, %v555_v60 }
 0x2ec   :  { %v722_v62 = vpop.xlane.xlu0 %721 }
 0x2ed   :  { %1721 = vpow2.f32 %v556_v61  ;;  %v723_v63 = vsub.f32 %v716_v38, %v722_v62 }
 0x2ef   :  { %v1976_v0 = vpop.eup %1717  ;;  %v724_v1 = vmul.f32 1.442695, %v723_v63 }
 0x2f0   :  { %v906_v2 = vpop.xlane.xlu1 %905  ;;  %v222_v3 = vsel %vm141_vm2, %v1976_v0, 0.0 }
 0x2f1   :  { %1723 = vpow2.f32 %v724_v1  ;;  %v907_v4 = vsub.f32 %v900_v41, %v906_v2  ;;  %223 = vadd.xlane.f32.xlu1 %v222_v3 }
 0x2f3   :  { %v1980_v5 = vpop.eup %1719  ;;  %v908_v6 = vmul.f32 1.442695, %v907_v4 }
 0x2f4   :  { %v1074_v7 = vpop.xlane.xlu0 %1073  ;;  %v390_v9 = vsel %vm141_vm2, %v1980_v5, 0.0 }
 0x2f5   :  { %1725 = vpow2.f32 %v908_v6  ;;  %v1075_v10 = vsub.f32 %v1068_v44, %v1074_v7  ;;  %391 = vadd.xlane.f32.xlu0 %v390_v9 }
 0x2f7   :  { %v1984_v11 = vpop.eup %1721  ;;  %v1076_v12 = vmul.f32 1.442695, %v1075_v10 }
 0x2f8   :  { %v558_v14 = vsel %vm141_vm2, %v1984_v11, 0.0  ;;  %v1242_v21 = vpop.xlane.xlu1 %1241 }
 0x2f9   :  { %1727 = vpow2.f32 %v1076_v12  ;;  %559 = vadd.xlane.f32.xlu1 %v558_v14  ;;  %v1243_v22 = vsub.f32 %v1236_v47, %v1242_v21 }
 0x2fb   :  { %v1988_v15 = vpop.eup %1723  ;;  %v1244_v24 = vmul.f32 1.442695, %v1243_v22 }
 0x2fc   :  { %v726_v16 = vsel %vm141_vm2, %v1988_v15, 0.0  ;;  %v1410_v23 = vpop.xlane.xlu0 %1409  ;;  %v567_v31 = vpop.permute.xlu1 %566 }
 0x2fd   :  { %727 = vadd.xlane.f32.xlu0 %v726_v16  ;;  %v1411_v25 = vsub.f32 %v1404_v50, %v1410_v23  ;;  %1729 = vpow2.f32 %v1244_v24 }
 0x2ff   :  { %v1992_v17 = vpop.eup %1725  ;;  %v1412_v26 = vmul.f32 1.442695, %v1411_v25 }
 0x300   :  { %v910_v18 = vsel %vm141_vm2, %v1992_v17, 0.0  ;;  %v735_v32 = vpop.permute.xlu1 %734  ;;  %v399_v33 = vpop.permute.xlu0 %398 }
 0x301   :  { %911 = vadd.xlane.f32.xlu1 %v910_v18  ;;  %1731 = vpow2.f32 %v1412_v26 }
 0x303   :  { %v1996_v19 = vpop.eup %1727 }
 0x304   :  { %v1078_v20 = vsel %vm141_vm2, %v1996_v19, 0.0 }
 0x305   :  { %1079 = vadd.xlane.f32.xlu0 %v1078_v20 }
 0x307   :  { %v2004_v27 = vpop.eup %1729 }
 0x308   :  { %v1246_v28 = vsel %vm141_vm2, %v2004_v27, 0.0 }
 0x30b   :  { %v2008_v29 = vpop.eup %1731 }
 0x30c   :  { %v1414_v30 = vsel %vm141_vm2, %v2008_v29, 0.0 }
 0x312   :  { %1086 = vrot.lane.b32.xlu1 %v1910_v13, %s1837_s20 }
 0x31b   :  { %918 = vrot.lane.b32.xlu0 %v1910_v13, %s1834_s17 }
 0x336   :  { %1247 = vadd.xlane.f32.xlu1 %v1246_v28 }
 0x33a   :  { %1415 = vadd.xlane.f32.xlu0 %v1414_v30 }
 0x347   :  { %1422 = vrot.lane.b32.xlu1 %v1910_v13, %s1836_s19 }
 0x350   :  { %1254 = vrot.lane.b32.xlu0 %v1910_v13, %s1835_s18 }
 0x37e   :  { %v224_v34 = vpop.xlane.xlu1 %223 }
 0x37f   :  { %1733 = vrcp.f32 %v224_v34 }
 0x382   :  { %v392_v35 = vpop.xlane.xlu0 %391 }
 0x383   :  { %1735 = vrcp.f32 %v392_v35 }
 0x386   :  { %v560_v36 = vpop.xlane.xlu1 %559 }
 0x387   :  { %1737 = vrcp.f32 %v560_v36 }
 0x389   :  { %v1734_v37 = vpop.eup %1733 }
 0x38a   :  { %v226_v38 = vmul.f32 %v1734_v37, %v224_v34  ;;  %v728_v39 = vpop.xlane.xlu0 %727 }
 0x38b   :  { %1739 = vrcp.f32 %v728_v39 }
 0x38c   :  { %v227_v40 = vsub.f32 2.0, %v226_v38 }
 0x38d   :  { %v1736_v41 = vpop.eup %1735 }
 0x38e   :  { %v228_v42 = vmul.f32 %v1734_v37, %v227_v40  ;;  %v394_v43 = vmul.f32 %v1736_v41, %v392_v35  ;;  %v912_v44 = vpop.xlane.xlu1 %911 }
 0x38f   :  { %1741 = vrcp.f32 %v912_v44 }
 0x390   :  { %v229_v13 = vmul.f32 %v1976_v0, %v228_v42  ;;  %v395_v45 = vsub.f32 2.0, %v394_v43 }
 0x391   :  { %v1738_v46 = vpop.eup %1737 }
 0x392   :  { %v396_v47 = vmul.f32 %v1736_v41, %v395_v45  ;;  %v562_v48 = vmul.f32 %v1738_v46, %v560_v36  ;;  %1617 = vmatmul.mubr.msk.f32.vlgmr.msra.gmra.mrb[2].mxu1 %vm141_vm2, %v229_v13  ;;  %v1080_v49 = vpop.xlane.xlu0 %1079  ;;  %v1087_v4 = vpop.permute.xlu1 %1086 }
 0x393   :  { %1625 = vmatpush3.msra.mxu1 %v399_v33  ;;  %1743 = vrcp.f32 %v1080_v49  ;;  %1626 = vmatprep.mubr.msk.f32.mxu1 %vm1826_vm1, %v1825_v8 }
 0x394   :  { %v397_v50 = vmul.f32 %v1980_v5, %v396_v47  ;;  %v563_v51 = vsub.f32 2.0, %v562_v48  ;;  %1634 = vmatprep.subr.mxu1 %v1825_v8 }
 0x395   :  { %v1740_v52 = vpop.eup %1739 }
 0x396   :  { %v564_v53 = vmul.f32 %v1738_v46, %v563_v51  ;;  %v730_v54 = vmul.f32 %v1740_v52, %v728_v39  ;;  %1627 = vmatmul.mubr.msk.f32.vlgmr.msra.gmra.mrb[4].mxu1 %vm141_vm2, %v397_v50  ;;  %v919_v1 = vpop.permute.xlu0 %918 }
 0x397   :  { %1635 = vmatpush3.msra.mxu1 %v567_v31  ;;  %1636 = vmatprep.mubr.msk.f32.mxu1 %vm1826_vm1, %v1825_v8 }
 0x398   :  { %v565_v55 = vmul.f32 %v1984_v11, %v564_v53  ;;  %v731_v56 = vsub.f32 2.0, %v730_v54  ;;  %1644 = vmatprep.subr.mxu1 %v1825_v8 }
 0x399   :  { %v1742_v57 = vpop.eup %1741 }
 0x39a   :  { %v732_v58 = vmul.f32 %v1740_v52, %v731_v56  ;;  %v914_v59 = vmul.f32 %v1742_v57, %v912_v44  ;;  %1637 = vmatmul.mubr.msk.f32.vlgmr.msra.gmra.mrb[6].mxu1 %vm141_vm2, %v565_v55 }
 0x39b   :  { %1645 = vmatpush3.msra.mxu1 %v735_v32  ;;  %1646 = vmatprep.mubr.msk.f32.mxu1 %vm1826_vm1, %v1825_v8 }
 0x39c   :  { %v733_v60 = vmul.f32 %v1988_v15, %v732_v58  ;;  %v915_v61 = vsub.f32 2.0, %v914_v59  ;;  %1654 = vmatprep.subr.mxu1 %v1825_v8 }
 0x39d   :  { %v1744_v62 = vpop.eup %1743 }
 0x39e   :  { %v916_v63 = vmul.f32 %v1742_v57, %v915_v61  ;;  %v1082_v0 = vmul.f32 %v1744_v62, %v1080_v49  ;;  %1647 = vmatmul.mubr.msk.f32.vlgmr.msra.gmra.mrb[8].mxu1 %vm141_vm2, %v733_v60 }
 0x39f   :  { %1655 = vmatpush3.msra.mxu1 %v919_v1  ;;  %1656 = vmatprep.mubr.msk.f32.mxu1 %vm1826_vm1, %v1825_v8 }
 0x3a0   :  { %v917_v2 = vmul.f32 %v1992_v17, %v916_v63  ;;  %v1083_v3 = vsub.f32 2.0, %v1082_v0  ;;  %1664 = vmatprep.subr.mxu1 %v1825_v8 }
 0x3a2   :  { %v1084_v5 = vmul.f32 %v1744_v62, %v1083_v3  ;;  %1657 = vmatmul.mubr.msk.f32.vlgmr.msra.gmra.mrb[10].mxu1 %vm141_vm2, %v917_v2 }
 0x3a3   :  { %1665 = vmatpush3.msra.mxu1 %v1087_v4  ;;  %1666 = vmatprep.mubr.msk.f32.mxu1 %vm1826_vm1, %v1825_v8 }
 0x3a4   :  { %v1085_v6 = vmul.f32 %v1996_v19, %v1084_v5  ;;  %1674 = vmatprep.subr.mxu1 %v1825_v8 }
 0x3a6   :  { %1667 = vmatmul.mubr.msk.f32.vlgmr.msra.gmra.mrb[12].mxu1 %vm141_vm2, %v1085_v6 }
 0x3a7   :  { %1676 = vmatprep.mubr.msk.f32.mxu1 %vm1826_vm1, %v1825_v8 }
 0x3c3   :  { %v1248_v7 = vpop.xlane.xlu1 %1247 }
 0x3c4   :  { %1745 = vrcp.f32 %v1248_v7 }
 0x3c7   :  { %v1416_v9 = vpop.xlane.xlu0 %1415  ;;  %v1423_v20 = vpop.permute.xlu1 %1422 }
 0x3c8   :  { %1747 = vrcp.f32 %v1416_v9 }
 0x3cb   :  { %v1255_v10 = vpop.permute.xlu0 %1254 }
 0x3cc   :  { %1675 = vmatpush3.msra.mxu1 %v1255_v10 }
 0x3cd   :  { %1684 = vmatprep.subr.mxu1 %v1825_v8 }
 0x3ce   :  { %v1746_v11 = vpop.eup %1745 }
 0x3cf   :  { %v1250_v12 = vmul.f32 %v1746_v11, %v1248_v7 }
 0x3d1   :  { %v1251_v14 = vsub.f32 2.0, %v1250_v12 }
 0x3d2   :  { %v1748_v15 = vpop.eup %1747 }
 0x3d3   :  { %v1252_v16 = vmul.f32 %v1746_v11, %v1251_v14  ;;  %v1418_v17 = vmul.f32 %v1748_v15, %v1416_v9 }
 0x3d5   :  { %v1253_v18 = vmul.f32 %v2004_v27, %v1252_v16  ;;  %v1419_v19 = vsub.f32 2.0, %v1418_v17 }
 0x3d7   :  { %v1420_v21 = vmul.f32 %v1748_v15, %v1419_v19  ;;  %1677 = vmatmul.mubr.msk.f32.vlgmr.msra.gmra.mrb[14].mxu1 %vm141_vm2, %v1253_v18 }
 0x3d8   :  { %1685 = vmatpush3.msra.mxu1 %v1423_v20  ;;  %1686 = vmatprep.mubr.msk.f32.mxu1 %vm1826_vm1, %v1825_v8 }
 0x3d9   :  { %v1421_v22 = vmul.f32 %v2008_v29, %v1420_v21 }
 0x3db   :  { %1687 = vmatmul.mubr.msk.f32.vlgmr.msra.gmra.mrb[16].mxu1 %vm141_vm2, %v1421_v22 }
 0x465   :  { %v302_v23 = vpop.f32.mrb[2].mxu1 }
 0x466   :  { %v1618_v24 = vpop.f32.mrb[3].mxu1 }
 0x469   :  { %v470_v25 = vpop.f32.mrb[4].mxu1 }
 0x46a   :  { %811 = vrot.lane.b32.xlu0 %v470_v25, %s1823_s23  ;;  %v1628_v26 = vpop.f32.mrb[5].mxu1 }
 0x46d   :  { %v638_v27 = vpop.f32.mrb[6].mxu1 }
 0x46e   :  { %815 = vrot.lane.b32.xlu1 %v638_v27, %s1838_s21  ;;  %v1638_v28 = vpop.f32.mrb[7].mxu1 }
 0x471   :  { %v806_v30 = vpop.f32.mrb[8].mxu1 }
 0x472   :  { %819 = vrot.lane.b32.xlu0 %v806_v30, %s1839_s24  ;;  %v1648_v31 = vpop.f32.mrb[9].mxu1 }
 0x475   :  { %v990_v32 = vpop.f32.mrb[10].mxu1 }
 0x476   :  { %v1658_v8 = vpop.f32.mrb[11].mxu1 }
 0x479   :  { %v1158_v33 = vpop.f32.mrb[12].mxu1 }
 0x47a   :  { %1499 = vrot.lane.b32.xlu1 %v1158_v33, %s1823_s23  ;;  %v1668_v29 = vpop.f32.mrb[13].mxu1 }
 0x4aa   :  { %v1326_v34 = vpop.f32.mrb[14].mxu1 }
 0x4ab   :  { %1503 = vrot.lane.b32.xlu0 %v1326_v34, %s1838_s21  ;;  %v1678_v35 = vpop.f32.mrb[15].mxu1 }
 0x4ae   :  { %v1494_v36 = vpop.f32.mrb[16].mxu1 }
 0x4af   :  { %1507 = vrot.lane.b32.xlu1 %v1494_v36, %s1839_s24  ;;  %v1688_v37 = vpop.f32.mrb[17].mxu1 }
 0x4dc   :  { %v812_v38 = vpop.permute.xlu0 %811 }
 0x4dd   :  { %v822_v40 = vsel %vm141_vm2, %v302_v23, %v812_v38 }
 0x4e0   :  { %v816_v39 = vpop.permute.xlu1 %815 }
 0x4e1   :  { %v824_v41 = vsel %vm823_vm3, %v822_v40, %v816_v39 }
 0x4e4   :  { %v820_v42 = vpop.permute.xlu0 %819 }
 0x4e5   :  { %v826_v43 = vsel %vm825_vm4, %v824_v41, %v820_v42 }
 0x4e6   :  { %1513 = vst.msk [vmem:[#allocation7] sm:$0xff] %vm56_vm0, %v826_v43 }
 0x4ec   :  { %v1500_v44 = vpop.permute.xlu1 %1499 }
 0x4ed   :  { %v1510_v45 = vsel %vm141_vm2, %v990_v32, %v1500_v44 }
 0x51d   :  { %v1504_v13 = vpop.permute.xlu0 %1503 }
 0x51e   :  { %v1511_v46 = vsel %vm823_vm3, %v1510_v45, %v1504_v13 }
 0x521   :  { %v1508_v47 = vpop.permute.xlu1 %1507 }
 0x522   :  { %v1512_v48 = vsel %vm825_vm4, %v1511_v46, %v1508_v47 }
 0x523   :  { %1514 = vst.msk [vmem:[#allocation7 + $0x8] sm:$0xff] %vm56_vm0, %v1512_v48 }
 0x524   :  { %1804 = shalt.err (!%p1801_p6)
}
 0x525   :  { %s1805_s30 = scalar_lea.hbm %s2076_s3, 256 }
 0x526   :  { %p1806_p7 = scmp.ne.s32.totalorder %s2076_s3, %s1805_s30  ;;  %p1809_p8 = scmp.lt.u32.totalorder %s1805_s30, %s2076_s3 }
 0x528   :  { %p1811_p9 = pnand %p1809_p8, %p1806_p7 }
 0x52a   :  { %1814 = shalt.err (!%p1811_p9)
}
 0x52b   :  { %1526 = dma.vmem_to_hbm [thread:$0]  %s1521_s26, 256, %s2076_s3, [#allocation4], %s1822_s22, %s1822_s22, %s1823_s23  }
 0x52c   :  { %1819 = dma.done.wait [#allocation4], 256  }
 0x52d   :  { %1820 = vsyncadd [#allocation4], 4294967040 }
 0x52e   :  { %1530 = vsyncpa [#allocation3], 1 }
 0x52f   :  { %1531 = vsyncpa [#allocation6], 1 }
 0x530   :  { %1532 = vsyncpa [#allocation4], 1 }

</bundles_post_ra>
